<compile_context>
chip_gen: v5e
topology: v5e:2x2
jax: 0.10.0
libtpu: 0.0.40
codegen_flags: <defaults>
</compile_context>

<pallas_src>
import functools

import jax
import jax.numpy as jnp
from jax.experimental import pallas as pl
from jax.experimental.pallas import tpu as pltpu


# ---------------------------------------------------------------------------
# Kernels
# ---------------------------------------------------------------------------

def _dc_kernel_blockdiag(x_ref, w1_ref, b1_ref, w2_ref, b2_ref, w3_ref, b3_ref,
                         q_ref, *, compute_dtype):
    """All critics fused into 3 MXU dots (column-stacked W1, block-diag W2/W3).

    x_ref : (TB, IN)         w1_ref: (IN, E*H1)       b1_ref: (1, E*H1)
    w2_ref: (E*H1, E*H2)     b2_ref: (1, E*H2)
    w3_ref: (E*H2, E*OUT)    b3_ref: (1, E*OUT)
    q_ref : (TB, E*OUT)      lane-packed per-critic outputs (one dense store)
    """
    x = x_ref[...].astype(compute_dtype)
    # Layer 1: single dot on the pre-concatenated [obs, action].
    h = jnp.dot(x, w1_ref[...], preferred_element_type=jnp.float32) + b1_ref[...]
    h = jnp.maximum(h, 0.0)                 # bias/ReLU kept in f32 (v5e-friendly)
    # Layer 2
    h = jnp.dot(h.astype(compute_dtype), w2_ref[...],
                preferred_element_type=jnp.float32) + b2_ref[...]
    h = jnp.maximum(h, 0.0)
    # Layer 3 (no activation)
    q = jnp.dot(h.astype(compute_dtype), w3_ref[...],
                preferred_element_type=jnp.float32) + b3_ref[...]
    q_ref[...] = q.astype(q_ref.dtype)


def _dc_kernel_percritic(x_ref, w1_ref, b1_ref, w2_ref, b2_ref, w3_ref, b3_ref,
                         q_ref, *, critic_num, output_dim, compute_dtype):
    """Per-critic unrolled dots (used when E*H exceeds one MXU pass).

    x_ref : (TB, IN)          w1_ref: (E, IN, H1)    b1_ref: (E, 1, H1)
    w2_ref: (E, H1, H2)       b2_ref: (E, 1, H2)
    w3_ref: (E, H2, OUT)      b3_ref: (E, 1, OUT)
    q_ref : (TB, E*OUT)
    """
    x = x_ref[...].astype(compute_dtype)
    for e in range(critic_num):             # statically unrolled
        h = jnp.dot(x, w1_ref[e], preferred_element_type=jnp.float32) + b1_ref[e]
        h = jnp.maximum(h, 0.0)
        h = jnp.dot(h.astype(compute_dtype), w2_ref[e],
                    preferred_element_type=jnp.float32) + b2_ref[e]
        h = jnp.maximum(h, 0.0)
        q = jnp.dot(h.astype(compute_dtype), w3_ref[e],
                    preferred_element_type=jnp.float32) + b3_ref[e]
        q_ref[:, e * output_dim:(e + 1) * output_dim] = q.astype(q_ref.dtype)


# ---------------------------------------------------------------------------
# One-time weight packing (call OFF the per-step hot path; re-pack only when
# the parameters change).
# ---------------------------------------------------------------------------

def pack_double_critic_params(params, *, compute_dtype=jnp.float32, mxu_width=256):
    w1, b1, w2, b2, w3, b3 = (params["w1"], params["b1"], params["w2"],
                              params["b2"], params["w3"], params["b3"])
    E, IN, H1 = w1.shape
    H2 = w2.shape[2]
    OUT = w3.shape[2]
    # Block-diag fusion only while every packed lane dim fits one MXU pass;
    # beyond that it is an E^2 FLOP / VMEM blow-up -> per-critic dots.
    block_diag = (E * H1 <= mxu_width) and (E * H2 <= mxu_width) and (E * OUT <= mxu_width)
    if block_diag:
        packed = dict(
            w1=jnp.concatenate([w1[e] for e in range(E)], axis=-1).astype(compute_dtype),
            b1=b1[:, 0, :].reshape(1, E * H1).astype(jnp.float32),
            w2=jax.scipy.linalg.block_diag(*[w2[e] for e in range(E)]).astype(compute_dtype),
            b2=b2[:, 0, :].reshape(1, E * H2).astype(jnp.float32),
            w3=jax.scipy.linalg.block_diag(*[w3[e] for e in range(E)]).astype(compute_dtype),
            b3=b3[:, 0, :].reshape(1, E * OUT).astype(jnp.float32),
        )
    else:
        packed = dict(
            w1=w1.astype(compute_dtype), b1=b1.astype(jnp.float32),
            w2=w2.astype(compute_dtype), b2=b2.astype(jnp.float32),
            w3=w3.astype(compute_dtype), b3=b3.astype(jnp.float32),
        )
    meta = dict(block_diag=block_diag, critic_num=E, input_dim=IN,
                output_dim=OUT, compute_dtype=compute_dtype)
    return packed, meta


def _pick_batch_tile(B):
    for tb in (512, 256, 128):
        if B > tb and B % tb == 0:
            return tb
    return B


# ---------------------------------------------------------------------------
# Forward
# ---------------------------------------------------------------------------

def double_critic_forward(obs, action, packed, meta):
    """Returns (q_all, q_min):
      q_all : (critic_num, B, OUT)  -- reduce=False path
      q_min : (B, OUT)              -- reduce=True ('min') path
    """
    E = meta["critic_num"]
    OUT = meta["output_dim"]
    cd = meta["compute_dtype"]

    x = obs if action is None else jnp.concatenate([obs, action], axis=-1)
    B, IN = x.shape
    assert IN == meta["input_dim"], "obs_dim + act_dim must equal input_dim"

    EH1 = int(packed["b1"].size)
    EH2 = int(packed["b2"].size)
    EOUT = E * OUT
    H1, H2 = EH1 // E, EH2 // E

    TB = _pick_batch_tile(B)
    grid = (B // TB,)

    if meta["block_diag"]:
        kernel = functools.partial(_dc_kernel_blockdiag, compute_dtype=cd)
    else:
        kernel = functools.partial(_dc_kernel_percritic, critic_num=E,
                                   output_dim=OUT, compute_dtype=cd)

    def _resident(a):  # weights keep the same block index -> stay VMEM-resident
        return pl.BlockSpec(a.shape, lambda i: (0,) * a.ndim)

    in_specs = [pl.BlockSpec((TB, IN), lambda i: (i, 0))] + [
        _resident(packed[k]) for k in ("w1", "b1", "w2", "b2", "w3", "b3")]
    out_specs = pl.BlockSpec((TB, EOUT), lambda i: (i, 0))

    # VMEM budget: resident (double-buffered) weights + x/q tiles + activations.
    itemsize = jnp.dtype(cd).itemsize
    weight_bytes = sum(int(v.size) * v.dtype.itemsize for v in packed.values())
    act_bytes = TB * (IN + EH1 + EH2 + EOUT) * (4 + itemsize)
    io_bytes = 2 * TB * (IN + EOUT) * 4
    vmem_limit = int(1.5 * (2 * weight_bytes + act_bytes + io_bytes)) + (4 << 20)
    vmem_limit = min(max(vmem_limit, 16 << 20), 64 << 20)  # v7x physical-safe cap
    # TODO(synk): if packed weights approach ~32 MiB (v7x), stream W2/W3 with a
    # K-grid instead of whole-array VMEM residency.

    flops = 2 * B * E * (IN * H1 + H1 * H2 + H2 * OUT)
    bytes_accessed = int(x.size * 4 + weight_bytes + B * EOUT * 4)

    q_pack = pl.pallas_call(
        kernel,
        out_shape=jax.ShapeDtypeStruct((B, EOUT), jnp.float32),
        grid_spec=pltpu.PrefetchScalarGridSpec(
            num_scalar_prefetch=0, grid=grid,
            in_specs=in_specs, out_specs=out_specs),
        compiler_params=pltpu.CompilerParams(
            dimension_semantics=("parallel",),
            vmem_limit_bytes=vmem_limit),
        cost_estimate=pl.CostEstimate(flops=flops, transcendentals=0,
                                      bytes_accessed=bytes_accessed),
    )(x, packed["w1"], packed["b1"], packed["w2"], packed["b2"],
      packed["w3"], packed["b3"])

    # reduce=False layout + wrapper-side min (trivially cheap on (B, E*OUT)).
    q_all = q_pack.reshape(B, E, OUT).transpose(1, 0, 2)
    q_min = jnp.min(q_pack.reshape(B, E, OUT), axis=1)
    return q_all, q_min


def init_params(key, critic_num, input_dim, hidden_dims, output_dim):
    """Synthetic EnsembleMLP params: weights (E, in, out), biases (E, 1, out)."""
    dims = [input_dim] + list(hidden_dims) + [output_dim]
    params = {}
    for li in range(len(dims) - 1):
        key, kw, kb = jax.random.split(key, 3)
        scale = 1.0 / jnp.sqrt(jnp.float32(dims[li]))
        params[f"w{li + 1}"] = scale * jax.random.normal(
            kw, (critic_num, dims[li], dims[li + 1]), dtype=jnp.float32)
        params[f"b{li + 1}"] = scale * jax.random.normal(
            kb, (critic_num, 1, dims[li + 1]), dtype=jnp.float32)
    return params


if __name__ == "__main__":
    B = 8
    OBS_DIM = 12
    ACT_DIM = 4
    HIDDEN = [32, 32]
    OUT_DIM = 1
    CRITIC_NUM = 2

    key = jax.random.PRNGKey(0)
    k_obs, k_act, k_par = jax.random.split(key, 3)
    obs = jax.random.normal(k_obs, (B, OBS_DIM), dtype=jnp.float32)
    action = jax.random.normal(k_act, (B, ACT_DIM), dtype=jnp.float32)
    params = init_params(k_par, CRITIC_NUM, OBS_DIM + ACT_DIM, HIDDEN, OUT_DIM)

    # Pure-JAX reference.
    x_ref_in = jnp.concatenate([obs, action], axis=-1)

    def ref_forward(x, p):
        outs = []
        for e in range(CRITIC_NUM):
            h = jnp.maximum(x @ p["w1"][e] + p["b1"][e], 0.0)
            h = jnp.maximum(h @ p["w2"][e] + p["b2"][e], 0.0)
            outs.append(h @ p["w3"][e] + p["b3"][e])
        q_all_r = jnp.stack(outs, axis=0)
        return q_all_r, jnp.min(q_all_r, axis=0)

    q_all_ref, q_min_ref = ref_forward(x_ref_in, params)

    # 1) fused block-diagonal path, f32 (default at this small size).
    packed, meta = pack_double_critic_params(params)          # packed ONCE, off hot path
    fwd = jax.jit(functools.partial(double_critic_forward, packed=packed, meta=meta))
    q_all, q_min = jax.block_until_ready(fwd(obs, action))
    assert q_all.shape == (CRITIC_NUM, B, OUT_DIM) and q_min.shape == (B, OUT_DIM)
    assert jnp.allclose(q_all, q_all_ref, atol=1e-4, rtol=1e-4)
    assert jnp.allclose(q_min, q_min_ref, atol=1e-4, rtol=1e-4)

    # 2) per-critic-dot path (what large E*H configs use), forced here for coverage.
    packed_pc, meta_pc = pack_double_critic_params(params, mxu_width=1)
    fwd_pc = jax.jit(functools.partial(double_critic_forward, packed=packed_pc, meta=meta_pc))
    q_all_pc, q_min_pc = jax.block_until_ready(fwd_pc(obs, action))
    assert jnp.allclose(q_all_pc, q_all_ref, atol=1e-4, rtol=1e-4)
    assert jnp.allclose(q_min_pc, q_min_ref, atol=1e-4, rtol=1e-4)

    # 3) bf16 weights/activations (v6e/v7x MXU path), f32 accumulation.
    packed_bf, meta_bf = pack_double_critic_params(params, compute_dtype=jnp.bfloat16)
    fwd_bf = jax.jit(functools.partial(double_critic_forward, packed=packed_bf, meta=meta_bf))
    q_all_bf, q_min_bf = jax.block_until_ready(fwd_bf(obs, action))
    assert jnp.allclose(q_all_bf, q_all_ref, atol=1.5e-1, rtol=1.5e-1)

    print("KERNEL_OK")
</pallas_src>

<mosaic_0001>
module attributes {stable_mosaic.version = 11 : i64} {
  func.func @_dc_kernel_blockdiag(%arg0: i32, %arg1: memref<8x16xf32, #tpu.memory_space<vmem>>, %arg2: memref<16x64xf32, #tpu.memory_space<vmem>>, %arg3: memref<1x64xf32, #tpu.memory_space<vmem>>, %arg4: memref<64x64xf32, #tpu.memory_space<vmem>>, %arg5: memref<1x64xf32, #tpu.memory_space<vmem>>, %arg6: memref<64x2xf32, #tpu.memory_space<vmem>>, %arg7: memref<1x2xf32, #tpu.memory_space<vmem>>, %arg8: memref<8x2xf32, #tpu.memory_space<vmem>>) attributes {dimension_semantics = [#tpu.dimension_semantics<parallel>], iteration_bounds = array<i64: 1>, scalar_prefetch = 0 : i64, scratch_operands = 0 : i64, tpu.core_type = #tpu.core_type<tc>, window_params = [{transform_indices = @transform_0, window_bounds = array<i64: 8, 16>}, {pipeline_mode = #tpu.pipeline_mode<synchronous>, transform_indices = @transform_1, window_bounds = array<i64: 16, 64>}, {pipeline_mode = #tpu.pipeline_mode<synchronous>, transform_indices = @transform_2, window_bounds = array<i64: 1, 64>}, {pipeline_mode = #tpu.pipeline_mode<synchronous>, transform_indices = @transform_3, window_bounds = array<i64: 64, 64>}, {pipeline_mode = #tpu.pipeline_mode<synchronous>, transform_indices = @transform_4, window_bounds = array<i64: 1, 64>}, {pipeline_mode = #tpu.pipeline_mode<synchronous>, transform_indices = @transform_5, window_bounds = array<i64: 64, 2>}, {pipeline_mode = #tpu.pipeline_mode<synchronous>, transform_indices = @transform_6, window_bounds = array<i64: 1, 2>}, {transform_indices = @transform_7, window_bounds = array<i64: 8, 2>}]} {
    %c0 = arith.constant 0 : index
    %c0_0 = arith.constant 0 : index
    %0 = vector.load %arg1[%c0, %c0_0] : memref<8x16xf32, #tpu.memory_space<vmem>>, vector<8x16xf32>
    %c0_1 = arith.constant 0 : index
    %c0_2 = arith.constant 0 : index
    %1 = vector.load %arg2[%c0_1, %c0_2] : memref<16x64xf32, #tpu.memory_space<vmem>>, vector<16x64xf32>
    %cst = arith.constant dense<0.000000e+00> : vector<8x64xf32>
    %2 = tpu.matmul %0, %1, %cst {dimension_numbers = #tpu.dot_dimension_numbers<[1], [0], [0], [1], [0, 0, 1, 1], [], []>} : vector<8x16xf32>, vector<16x64xf32>, vector<8x64xf32> -> vector<8x64xf32>
    %c0_3 = arith.constant 0 : index
    %c0_4 = arith.constant 0 : index
    %3 = vector.load %arg3[%c0_3, %c0_4] : memref<1x64xf32, #tpu.memory_space<vmem>>, vector<1x64xf32>
    %4 = vector.broadcast %3 : vector<1x64xf32> to vector<8x64xf32>
    %5 = arith.addf %2, %4 : vector<8x64xf32>
    %cst_5 = arith.constant 0.000000e+00 : f32
    %6 = vector.broadcast %cst_5 : f32 to vector<8x64xf32>
    %7 = arith.maximumf %5, %6 : vector<8x64xf32>
    %c0_6 = arith.constant 0 : index
    %c0_7 = arith.constant 0 : index
    %8 = vector.load %arg4[%c0_6, %c0_7] : memref<64x64xf32, #tpu.memory_space<vmem>>, vector<64x64xf32>
    %cst_8 = arith.constant dense<0.000000e+00> : vector<8x64xf32>
    %9 = tpu.matmul %7, %8, %cst_8 {dimension_numbers = #tpu.dot_dimension_numbers<[1], [0], [0], [1], [0, 0, 1, 1], [], []>} : vector<8x64xf32>, vector<64x64xf32>, vector<8x64xf32> -> vector<8x64xf32>
    %c0_9 = arith.constant 0 : index
    %c0_10 = arith.constant 0 : index
    %10 = vector.load %arg5[%c0_9, %c0_10] : memref<1x64xf32, #tpu.memory_space<vmem>>, vector<1x64xf32>
    %11 = vector.broadcast %10 : vector<1x64xf32> to vector<8x64xf32>
    %12 = arith.addf %9, %11 : vector<8x64xf32>
    %cst_11 = arith.constant 0.000000e+00 : f32
    %13 = vector.broadcast %cst_11 : f32 to vector<8x64xf32>
    %14 = arith.maximumf %12, %13 : vector<8x64xf32>
    %c0_12 = arith.constant 0 : index
    %c0_13 = arith.constant 0 : index
    %15 = vector.load %arg6[%c0_12, %c0_13] : memref<64x2xf32, #tpu.memory_space<vmem>>, vector<64x2xf32>
    %cst_14 = arith.constant dense<0.000000e+00> : vector<8x2xf32>
    %16 = tpu.matmul %14, %15, %cst_14 {dimension_numbers = #tpu.dot_dimension_numbers<[1], [0], [0], [1], [0, 0, 1, 1], [], []>} : vector<8x64xf32>, vector<64x2xf32>, vector<8x2xf32> -> vector<8x2xf32>
    %c0_15 = arith.constant 0 : index
    %c0_16 = arith.constant 0 : index
    %17 = vector.load %arg7[%c0_15, %c0_16] : memref<1x2xf32, #tpu.memory_space<vmem>>, vector<1x2xf32>
    %18 = vector.broadcast %17 : vector<1x2xf32> to vector<8x2xf32>
    %19 = arith.addf %16, %18 : vector<8x2xf32>
    %c0_17 = arith.constant 0 : index
    %c0_18 = arith.constant 0 : index
    %20 = vector.load %arg8[%c0_17, %c0_18] : memref<8x2xf32, #tpu.memory_space<vmem>>, vector<8x2xf32>
    tpu.vector_store %arg8[%c0_17, %c0_18], %19 {strides = array<i32>} : memref<8x2xf32, #tpu.memory_space<vmem>>, vector<8x2xf32>,
    return
  }
  func.func @transform_0(%arg0: i32) -> (i32, i32) {
    %c0_i32 = arith.constant 0 : i32
    %c0_i32_0 = arith.constant 0 : i32
    return %arg0, %c0_i32 : i32, i32
  }
  func.func @transform_1(%arg0: i32) -> (i32, i32) {
    %c0_i32 = arith.constant 0 : i32
    %c0_i32_0 = arith.constant 0 : i32
    %c0_i32_1 = arith.constant 0 : i32
    return %c0_i32, %c0_i32_0 : i32, i32
  }
  func.func @transform_2(%arg0: i32) -> (i32, i32) {
    %c0_i32 = arith.constant 0 : i32
    %c0_i32_0 = arith.constant 0 : i32
    %c0_i32_1 = arith.constant 0 : i32
    return %c0_i32, %c0_i32_0 : i32, i32
  }
  func.func @transform_3(%arg0: i32) -> (i32, i32) {
    %c0_i32 = arith.constant 0 : i32
    %c0_i32_0 = arith.constant 0 : i32
    %c0_i32_1 = arith.constant 0 : i32
    return %c0_i32, %c0_i32_0 : i32, i32
  }
  func.func @transform_4(%arg0: i32) -> (i32, i32) {
    %c0_i32 = arith.constant 0 : i32
    %c0_i32_0 = arith.constant 0 : i32
    %c0_i32_1 = arith.constant 0 : i32
    return %c0_i32, %c0_i32_0 : i32, i32
  }
  func.func @transform_5(%arg0: i32) -> (i32, i32) {
    %c0_i32 = arith.constant 0 : i32
    %c0_i32_0 = arith.constant 0 : i32
    %c0_i32_1 = arith.constant 0 : i32
    return %c0_i32, %c0_i32_0 : i32, i32
  }
  func.func @transform_6(%arg0: i32) -> (i32, i32) {
    %c0_i32 = arith.constant 0 : i32
    %c0_i32_0 = arith.constant 0 : i32
    %c0_i32_1 = arith.constant 0 : i32
    return %c0_i32, %c0_i32_0 : i32, i32
  }
  func.func @transform_7(%arg0: i32) -> (i32, i32) {
    %c0_i32 = arith.constant 0 : i32
    %c0_i32_0 = arith.constant 0 : i32
    return %arg0, %c0_i32 : i32, i32
  }
}

</mosaic_0001>

<bundles_post_ra>
// kernel: double_critic_forward.1
= control target key start
LH: loop header
LB: loop body
LE: loop exit
PB: predicated region body
PF: predicated region fallthrough
CT: control target
= control target key end

     0   :  { %12 = vsyncpa [#allocation3], 0  ;;  %s303_s0 = inlined_call_operand.vmem [shape: f32[8,16], index: 0, kind: input, shape index: {}]   ;;  %s304_s1 = inlined_call_operand.vmem [shape: f32[16,64], index: 1, kind: input, shape index: {}]   ;;  %s305_s2 = inlined_call_operand.vmem [shape: f32[1,64], index: 2, kind: input, shape index: {}]   ;;  %s306_s3 = inlined_call_operand.hbm [shape: f32[64,64], index: 3, kind: input, shape index: {}]   ;;  %s307_s4 = inlined_call_operand.vmem [shape: f32[1,64], index: 4, kind: input, shape index: {}]   ;;  %s308_s5 = inlined_call_operand.hbm [shape: f32[64,2], index: 5, kind: input, shape index: {}]   ;;  %s309_s6 = inlined_call_operand.vmem [shape: f32[1,2], index: 6, kind: input, shape index: {}]   ;;  %s310_s7 = inlined_call_operand.vmem [shape: f32[8,2], index: 7, kind: output, shape index: {}]  }
   0x1   :  { %s24_s26 = sshll.u32 %s306_s3, 4  ;;  %s25_s26 = int_to_ptr.hbm [resolvable:$true] %s24_s26 }
   0x2   :  { %13 = vsyncpa [#allocation5], 0  ;;  %s232_s27 = smov [#allocation2]   ;;  %s39_s8 = sshll.u32 %s308_s5, 4  ;;  %s40_s8 = int_to_ptr.hbm [resolvable:$true] %s39_s8 }
   0x3   :  { %s26_s28 = sshll.u32 %s232_s27, 4  ;;  %s233_s9 = smov 128   ;;  %s27_s28 = int_to_ptr.vmem [resolvable:$true] %s26_s28 }
   0x4   :  { %s234_s10 = smov 8   ;;  %s235_s11 = smov [#allocation4]  }
   0x5   :  { %32 = dma.hbm_to_vmem [thread:$0]  %s25_s26, 1024, %s27_s28, [#allocation3], %s233_s9, %s233_s9, %s234_s10  }
   0x6   :  { %s41_s12 = sshll.u32 %s235_s11, 4  ;;  %s42_s12 = int_to_ptr.vmem [resolvable:$true] %s41_s12 }
   0x7   :  { %47 = dma.hbm_to_vmem [thread:$0]  %s40_s8, 1024, %s42_s12, [#allocation5], %s233_s9, %s233_s9, %s234_s10  }
   0x8   :  { %228 = dma.done.wait [#allocation3], 1024  }
   0x9   :  { %229 = vsyncadd [#allocation3], 4294966272 }
   0xa   :  { %230 = dma.done.wait [#allocation5], 1024  }
   0xb   :  { %231 = vsyncadd [#allocation5], 4294966272  ;;  %v60_v0 = vld [vmem:[%s304_s1 + $0x8] sm:$0xff]  ;;  %v59_v1 = vld [vmem:[%s304_s1] sm:$0xff]  ;;  %vm65_vm0 = vcmask 130048   ;;  %vm102_vm1 = vcmask 523264  }
   0xc   :  { %83 = vmatpush.msra.mxu0 %v60_v0  ;;  %v58_v2 = vld [vmem:[%s303_s0] sm:$0xff]  ;;  %v97_v3 = vld [vmem:[#allocation2 + $0x38] sm:$0xff]  ;;  %v96_v4 = vld [vmem:[#allocation2 + $0x30] sm:$0xff]  ;;  %vm162_vm2 = vcmask 15360  }
   0xd   :  { %114 = vmatpush.msra.mxu1 %v97_v3  ;;  %v95_v5 = vld [vmem:[#allocation2 + $0x28] sm:$0xff]  ;;  %v94_v6 = vld [vmem:[#allocation2 + $0x20] sm:$0xff]  ;;  %v93_v7 = vld [vmem:[#allocation2 + $0x18] sm:$0xff] }
   0xe   :  { %84 = vmatpush.msra.mxu0 %v59_v1  ;;  %v92_v8 = vld [vmem:[#allocation2 + $0x10] sm:$0xff]  ;;  %v91_v9 = vld [vmem:[#allocation2 + $0x8] sm:$0xff]  ;;  %v90_v10 = vld [vmem:[#allocation2] sm:$0xff] }
   0xf   :  { %170 = vmatmul.msk.f32.vlgmr.msra.gmra.mxu0 %vm65_vm0, %v58_v2  ;;  %115 = vmatpush.msra.mxu1 %v96_v4  ;;  %v134_v11 = vld [vmem:[#allocation4 + $0x38] sm:$0xff]  ;;  %v133_v12 = vld [vmem:[#allocation4 + $0x30] sm:$0xff]  ;;  %v132_v13 = vld [vmem:[#allocation4 + $0x28] sm:$0xff] }
  0x10   :  { %150 = vmatpush.msra.mxu2 %v134_v11  ;;  %v131_v14 = vld [vmem:[#allocation4 + $0x20] sm:$0xff]  ;;  %v130_v15 = vld [vmem:[#allocation4 + $0x18] sm:$0xff]  ;;  %v129_v20 = vld [vmem:[#allocation4 + $0x10] sm:$0xff] }
  0x11   :  { %116 = vmatpush.msra.mxu1 %v95_v5  ;;  %v177_v16 = vld [vmem:[%s305_s2] ss:$0 sm:$0xff]  ;;  %v128_v21 = vld [vmem:[#allocation4 + $0x8] sm:$0xff] }
  0x12   :  { %151 = vmatpush.msra.mxu2 %v133_v12  ;;  %v127_v22 = vld [vmem:[#allocation4] sm:$0xff] }
  0x13   :  { %117 = vmatpush.msra.mxu1 %v94_v6  ;;  %v178_v23 = vld [vmem:[%s307_s4] ss:$0 sm:$0xff] }
  0x14   :  { %152 = vmatpush.msra.mxu2 %v132_v13  ;;  %v179_v27 = vld [vmem:[%s309_s6] ss:$0 sm:$0xff] }
  0x15   :  { %118 = vmatpush.msra.mxu1 %v93_v7 }
  0x16   :  { %153 = vmatpush.msra.mxu2 %v131_v14 }
  0x17   :  { %119 = vmatpush.msra.mxu1 %v92_v8 }
  0x18   :  { %154 = vmatpush.msra.mxu2 %v130_v15 }
  0x19   :  { %120 = vmatpush.msra.mxu1 %v91_v9 }
  0x1a   :  { %155 = vmatpush.msra.mxu2 %v129_v20 }
  0x1b   :  { %121 = vmatpush.msra.mxu1 %v90_v10 }
  0x1c   :  { %156 = vmatpush.msra.mxu2 %v128_v21 }
  0x1e   :  { %157 = vmatpush.msra.mxu2 %v127_v22 }
  0x8c   :  { %v86_v17 = vpop.f32.mrf.mxu0 }
  0x8d   :  { %v87_v18 = vadd.f32 %v177_v16, %v86_v17 }
  0x8f   :  { %v89_v19 = vmax.f32 %v87_v18, 0.0 }
  0x91   :  { %171 = vmatmul.msk.f32.vlgmr.msra.gmra.mxu1 %vm102_vm1, %v89_v19 }
 0x10e   :  { %v123_v24 = vpop.f32.mrf.mxu1 }
 0x10f   :  { %v124_v25 = vadd.f32 %v178_v23, %v123_v24 }
 0x111   :  { %v126_v26 = vmax.f32 %v124_v25, 0.0 }
 0x113   :  { %172 = vmatmul.msk.f32.vlgmr.msra.gmra.mxu2 %vm102_vm1, %v126_v26 }
 0x196   :  { %v159_v28 = vpop.f32.mrf.mxu2 }
 0x197   :  { %v160_v29 = vadd.f32 %v179_v27, %v159_v28 }
 0x199   :  { %163 = vst.msk [vmem:[%s310_s7] sm:$0xff] %vm162_vm2, %v160_v29 }
 0x19a   :  { %168 = vsyncpa [#allocation3], 1 }
 0x19b   :  { %169 = vsyncpa [#allocation5], 1 }

</bundles_post_ra>
